<compile_context>
chip_gen: v7x
topology: tpu7x:2x2x1
jax: 0.10.0
libtpu: 0.0.40
codegen_flags: <defaults>
</compile_context>

<pallas_src>
import jax
import jax.numpy as jnp
from jax.experimental import pallas as pl
from jax.experimental.pallas import tpu as pltpu


def _conv1x1_relu_kernel(x_ref, w_ref, b_ref, o_ref):
    # x_ref: (C_in, T)   -- one pixel tile of one batch element
    # w_ref: (C_out, C_in) -- resident across the whole grid
    # b_ref: (C_out, 1)    -- resident across the whole grid
    # o_ref: (C_out, T)    -- lane-dense output tile
    acc = jnp.dot(w_ref[...], x_ref[...], preferred_element_type=jnp.float32)
    acc = acc + b_ref[...]                      # broadcast bias over lanes
    o_ref[...] = jnp.maximum(acc, 0.0).astype(o_ref.dtype)


def _round_up(v, m):
    return -(-v // m) * m


def _ref_conv1x1_relu(x, weight, bias):
    n, c_in, h, w = x.shape
    c_out = weight.shape[0]
    xm = x.reshape(n, c_in, h * w)
    wm = weight.reshape(c_out, c_in)
    out = jnp.einsum("oc,ncp->nop", wm, xm) + bias.reshape(1, c_out, 1)
    return jnp.maximum(out, 0.0).reshape(n, c_out, h, w)


def conv2d_1x1_relu(x_nchw, weight, bias, *, tile_hw=16384,
                    small_pixel_threshold=4096, force_pallas=False):
    """1x1 conv + ReLU.

    x_nchw: (N, C_in, H, W); weight: (C_out, C_in, 1, 1); bias: (C_out,).
    Returns (N, C_out, H, W).
    """
    n, c_in, h, w = x_nchw.shape
    c_out = weight.shape[0]
    hw = h * w

    # Small-problem bypass: kernel launch + min-128-lane padding would
    # dominate.  Semantics are identical.
    if not force_pallas and n * hw < small_pixel_threshold:
        return _ref_conv1x1_relu(x_nchw, weight, bias)

    # Free reshapes (no transpose): pixels are the lane (last) dimension.
    x_mat = x_nchw.reshape(n, c_in, hw)
    w_mat = weight.reshape(c_out, c_in)
    b_mat = bias.reshape(c_out, 1)

    # Pixel tile: multiple of 128 lanes, capped at tile_hw (default 16384 ->
    # ~7.9 MiB double-buffered f32, fits every generation's scoped VMEM).
    tile_cap = tile_hw
    if n == 1:
        # Keep >=2 grid steps along the pixel axis so both v7x TensorCores
        # get work even for a single batch element.
        tile_cap = min(tile_cap, max(128, _round_up(-(-hw // 2), 128)))
    tile = max(128, min(tile_cap, _round_up(hw, 128)))

    # Ragged grid: no input padding, no output slicing; Pallas clips the last
    # (partial) block with a masked store.
    grid = (n, pl.cdiv(hw, tile))

    cost = pl.CostEstimate(
        flops=2 * n * hw * c_in * c_out,
        bytes_accessed=4 * (n * hw * (c_in + c_out) + c_in * c_out + c_out),
        transcendentals=0,
    )

    out_mat = pl.pallas_call(
        _conv1x1_relu_kernel,
        out_shape=jax.ShapeDtypeStruct((n, c_out, hw), x_nchw.dtype),
        grid_spec=pltpu.PrefetchScalarGridSpec(
            num_scalar_prefetch=0,
            grid=grid,
            in_specs=[
                pl.BlockSpec((pl.Squeezed(), c_in, tile),
                             lambda b, j: (b, 0, j)),
                pl.BlockSpec((c_out, c_in), lambda b, j: (0, 0)),   # resident
                pl.BlockSpec((c_out, 1), lambda b, j: (0, 0)),      # resident
            ],
            out_specs=pl.BlockSpec((pl.Squeezed(), c_out, tile),
                                   lambda b, j: (b, 0, j)),
        ),
        compiler_params=pltpu.CompilerParams(
            dimension_semantics=("parallel", "parallel")),
        cost_estimate=cost,
    )(x_mat, w_mat, b_mat)

    return out_mat.reshape(n, c_out, h, w)


if __name__ == "__main__":
    key = jax.random.PRNGKey(0)
    k_x, k_w, k_b, k_x2, k_x3 = jax.random.split(key, 5)

    C_IN, C_OUT = 48, 12
    weight = jax.random.normal(k_w, (C_OUT, C_IN, 1, 1), dtype=jnp.float32) * 0.1
    bias = jax.random.normal(k_b, (C_OUT,), dtype=jnp.float32) * 0.1

    # 1) Module-literal shape (1, 48, 1, 1): takes the tiny-input bypass.
    x_small = jax.random.normal(k_x, (1, C_IN, 1, 1), dtype=jnp.float32)
    out_small = conv2d_1x1_relu(x_small, weight, bias)
    jax.block_until_ready(out_small)
    ref_small = _ref_conv1x1_relu(x_small, weight, bias)
    assert out_small.shape == (1, C_OUT, 1, 1)
    assert jnp.allclose(out_small, ref_small, atol=1e-5, rtol=1e-5)

    # 2) Small batched spatial shape: force the Pallas path (tile-aligned).
    x_mid = jax.random.normal(k_x2, (2, C_IN, 16, 16), dtype=jnp.float32)
    out_mid = conv2d_1x1_relu(x_mid, weight, bias, force_pallas=True)
    jax.block_until_ready(out_mid)
    ref_mid = _ref_conv1x1_relu(x_mid, weight, bias)
    assert out_mid.shape == (2, C_OUT, 16, 16)
    assert jnp.allclose(out_mid, ref_mid, atol=1e-4, rtol=1e-4)

    # 3) Ragged shape (hw not a multiple of 128, n==1): exercises the
    #    partial-last-block masked store and the >=2-grid-step split.
    x_rag = jax.random.normal(k_x3, (1, C_IN, 10, 30), dtype=jnp.float32)
    out_rag = conv2d_1x1_relu(x_rag, weight, bias, force_pallas=True)
    jax.block_until_ready(out_rag)
    ref_rag = _ref_conv1x1_relu(x_rag, weight, bias)
    assert out_rag.shape == (1, C_OUT, 10, 30)
    assert jnp.allclose(out_rag, ref_rag, atol=1e-4, rtol=1e-4)

    print("KERNEL_OK")
</pallas_src>

<mosaic_0001>
module attributes {stable_mosaic.version = 11 : i64} {
  func.func @_conv1x1_relu_kernel(%arg0: i32, %arg1: i32, %arg2: memref<1x48x256xf32, #tpu.memory_space<vmem>>, %arg3: memref<12x48xf32, #tpu.memory_space<vmem>>, %arg4: memref<12x1xf32, #tpu.memory_space<vmem>>, %arg5: memref<1x12x256xf32, #tpu.memory_space<vmem>>) attributes {dimension_semantics = [#tpu.dimension_semantics<parallel>, #tpu.dimension_semantics<parallel>], iteration_bounds = array<i64: 2, 1>, scalar_prefetch = 0 : i64, scratch_operands = 0 : i64, tpu.core_type = #tpu.core_type<tc>, window_params = [{transform_indices = @transform_0, window_bounds = array<i64: 1, 48, 256>}, {pipeline_mode = #tpu.pipeline_mode<synchronous>, transform_indices = @transform_1, window_bounds = array<i64: 12, 48>}, {pipeline_mode = #tpu.pipeline_mode<synchronous>, transform_indices = @transform_2, window_bounds = array<i64: 12, 1>}, {transform_indices = @transform_3, window_bounds = array<i64: 1, 12, 256>}]} {
    %c0 = arith.constant 0 : index
    %c0_0 = arith.constant 0 : index
    %0 = vector.load %arg3[%c0, %c0_0] : memref<12x48xf32, #tpu.memory_space<vmem>>, vector<12x48xf32>
    %c0_1 = arith.constant 0 : index
    %c0_2 = arith.constant 0 : index
    %c0_3 = arith.constant 0 : index
    %1 = vector.load %arg2[%c0_1, %c0_2, %c0_3] : memref<1x48x256xf32, #tpu.memory_space<vmem>>, vector<1x48x256xf32>
    %2 = vector.shape_cast %1 : vector<1x48x256xf32> to vector<48x256xf32>
    %cst = arith.constant dense<0.000000e+00> : vector<12x256xf32>
    %3 = tpu.matmul %0, %2, %cst {dimension_numbers = #tpu.dot_dimension_numbers<[1], [0], [0], [1], [0, 0, 1, 1], [], []>} : vector<12x48xf32>, vector<48x256xf32>, vector<12x256xf32> -> vector<12x256xf32>
    %c0_4 = arith.constant 0 : index
    %c0_5 = arith.constant 0 : index
    %4 = vector.load %arg4[%c0_4, %c0_5] : memref<12x1xf32, #tpu.memory_space<vmem>>, vector<12x1xf32>
    %5 = vector.broadcast %4 : vector<12x1xf32> to vector<12x256xf32>
    %6 = arith.addf %3, %5 : vector<12x256xf32>
    %cst_6 = arith.constant 0.000000e+00 : f32
    %7 = vector.broadcast %cst_6 : f32 to vector<12x256xf32>
    %8 = arith.maximumf %6, %7 : vector<12x256xf32>
    %c0_7 = arith.constant 0 : index
    %c0_8 = arith.constant 0 : index
    %c0_9 = arith.constant 0 : index
    %9 = vector.load %arg5[%c0_7, %c0_8, %c0_9] : memref<1x12x256xf32, #tpu.memory_space<vmem>>, vector<1x12x256xf32>
    %10 = vector.shape_cast %9 : vector<1x12x256xf32> to vector<12x256xf32>
    %11 = vector.shape_cast %8 : vector<12x256xf32> to vector<1x12x256xf32>
    tpu.vector_store %arg5[%c0_7, %c0_8, %c0_9], %11 {strides = array<i32>} : memref<1x12x256xf32, #tpu.memory_space<vmem>>, vector<1x12x256xf32>,
    return
  }
  func.func @transform_0(%arg0: i32, %arg1: i32) -> (i32, i32, i32) {
    %c0_i32 = arith.constant 0 : i32
    %c0_i32_0 = arith.constant 0 : i32
    return %arg0, %c0_i32, %arg1 : i32, i32, i32
  }
  func.func @transform_1(%arg0: i32, %arg1: i32) -> (i32, i32) {
    %c0_i32 = arith.constant 0 : i32
    %c0_i32_0 = arith.constant 0 : i32
    %c0_i32_1 = arith.constant 0 : i32
    return %c0_i32, %c0_i32_0 : i32, i32
  }
  func.func @transform_2(%arg0: i32, %arg1: i32) -> (i32, i32) {
    %c0_i32 = arith.constant 0 : i32
    %c0_i32_0 = arith.constant 0 : i32
    %c0_i32_1 = arith.constant 0 : i32
    return %c0_i32, %c0_i32_0 : i32, i32
  }
  func.func @transform_3(%arg0: i32, %arg1: i32) -> (i32, i32, i32) {
    %c0_i32 = arith.constant 0 : i32
    %c0_i32_0 = arith.constant 0 : i32
    return %arg0, %c0_i32, %arg1 : i32, i32, i32
  }
}

</mosaic_0001>

<bundles_post_ra>
// kernel: tpu_custom_call.1
= control target key start
LH: loop header
LB: loop body
LE: loop exit
PB: predicated region body
PF: predicated region fallthrough
CT: control target
= control target key end

     0   :  { %8 = vsyncpa [#allocation3], 0  ;;  %s777_s0 = inlined_call_operand.hbm [shape: f32[2,48,256], index: 0, kind: input, shape index: {}]   ;;  %s778_s1 = inlined_call_operand.vmem [shape: f32[12,48], index: 1, kind: input, shape index: {}]   ;;  %s779_s2 = inlined_call_operand.vmem [shape: f32[12,1], index: 2, kind: input, shape index: {}]   ;;  %s780_s3 = inlined_call_operand.vmem [shape: f32[2,12,256], index: 3, kind: output, shape index: {}]  }
   0x1   :  { %10 = vsyncpa [#allocation3 + $0x1], 0  ;;  %s633_s12 = smov 0   ;;  %s635_s13 = smov 0  }
   0x2   :  { %s637_s14 = smov 0   ;;  %s639_s15 = smov 0  }
   0x3   :  { %s641_s16 = smov 0   ;;  %s643_s17 = smov 0  }
   0x4 LB: > { %s432_s18 = sadd.s32 4294967295, %s606_s17   ;;  %s28_s19 = sadd.s32 1, %s602_s16  ;;  %s606_s17 = sphi %s643_s17, %s16_s17   ;;  %s602_s16 = sphi %s641_s16, %s787_s16   ;;  %s598_s15 = sphi %s639_s15, %s786_s15   ;;  %s594_s14 = sphi %s637_s14, %s785_s14   ;;  %s590_s13 = sphi %s635_s13, %s784_s13   ;;  %s586_s12 = sphi %s633_s12, %s783_s12  }
   0x5   : > { %p30_p0 = scmp.ge.s32.totalorder %s28_s19, 2  ;;  %s37_s20 = sadd.s32 1, %s594_s14 }
   0x6   : > { %p44_p1 = scmp.ne.s32.totalorder %s594_s14, %s590_s13  ;;  %p45_p2 = scmp.eq.s32.totalorder %s606_s17, 0 }
   0x7   : > { %s789_s19 = smov (%p30_p0, %s28_s19), 0  ;;  %p50_p4 = scmp.ne.s32.totalorder %s590_s13, %s586_s12 }
   0x8   : > { %p46_p3 = por %p45_p2, %p44_p1  ;;  %s32_s21 = ssub.s32 %s602_s16, %s789_s19 }
   0x9   : > { %p51_p5 = scmp.eq.s32.totalorder %s432_s18, 0  ;;  %p35_p6 = scmp.eq.s32.totalorder %s32_s21, 0 }
   0xa   : > { %p472_p8 = scmp.lt.s32.totalorder %s606_s17, 2  ;;  %s150_s24 = sand.u32 1, %s594_s14  }
   0xb   : > { %p672_p7 = por %p51_p5, %p50_p4  ;;  %s464_s25 = smul.u32 1536, %s602_s16 }
   0xc   : > { %s678_s23 = scalar_select %p35_p6, %s594_s14, %s37_s20  }
   0xd   : > { %s463_s26 = smul.u32 96, %s150_s24  ;;  %s685_s29 = scalar_lea.hbm %s777_s0, %s464_s25 }
   0xe   : > { %p687_p9 = pnand %p472_p8, %p46_p3  ;;  %s693_s6 = scalar_lea.sflag [#allocation3], %s150_s24 }
   0xf   : > { %s154_s4 = scalar_lea.vmem [#allocation2], %s463_s26  ;;  %s526_s7 = scalar_lea.hbm %s685_s29, 1536 }
  0x10   : > { %s163_s5 = sshll.u32 %s154_s4, 4  ;;  %p527_p10 = scmp.ne.s32.totalorder %s685_s29, %s526_s7  ;;  %s691_s5 = int_to_ptr.vmem [resolvable:$true] %s163_s5 }
  0x11   : > { %p528_p11 = pneg %p687_p9  ;;  %s531_s10 = scalar_lea.hbm %s777_s0, 3072 }
  0x12   : > { %p532_p0 = scmp.lt.u32.totalorder %s685_s29, %s777_s0  ;;  %p533_p1 = scmp.lt.u32.totalorder %s531_s10, %s526_s7 }
  0x13   : > { %p529_p12 = pnand %p528_p11, %p527_p10  ;;  %p535_p3 = scmp.lt.u32.totalorder %s526_s7, %s685_s29 }
  0x14   : > { %p534_p2 = por %p533_p1, %p532_p0 }
  0x15   : > { %p530_p13 = pneg %p529_p12 }
  0x16   : > { %p536_p4 = por %p535_p3, %p534_p2 }
  0x18   : > { %p537_p5 = pnand %p536_p4, %p530_p13 }
  0x1a   : > { %540 = shalt.err (!%p537_p5)
}
  0x1b   : > { %s541_s18 = scalar_lea.vmem %s691_s5, 1536  ;;  %s608_s20 = smov [#allocation2]  }
  0x1c   : > { %p542_p6 = scmp.ne.s32.totalorder %s691_s5, %s541_s18  ;;  %s546_s21 = sshll.u32 %s608_s20, 4  ;;  %s547_s21 = int_to_ptr.vmem [resolvable:$false] %s546_s21 }
  0x1d   : > { %s548_s24 = scalar_lea.vmem %s547_s21, 3072  ;;  %p549_p12 = scmp.lt.s32.totalorder %s691_s5, %s547_s21 }
  0x1e   : > { %p544_p8 = pnand %p542_p6, %p528_p11  ;;  %p550_p0 = scmp.lt.s32.totalorder %s548_s24, %s541_s18 }
  0x20   : > { %p545_p10 = pneg %p544_p8  ;;  %p551_p1 = por %p550_p0, %p549_p12 }
  0x22   : > { %p552_p2 = pnand %p551_p1, %p545_p10 }
  0x24   : > { %555 = shalt.err (!%p552_p2)
}
  0x25   : > { %s609_s25 = smov 256   ;;  %s610_s26 = smov 16  }
  0x26   : > { %471 = dma.hbm_to_vmem [thread:$0]  (!%p687_p9), %s685_s29, 1536, %s691_s5, %s693_s6, %s609_s25, %s609_s25, %s610_s26  }
  0x27   : > { %p437_p11 = scmp.ge.s32.totalorder %s606_s17, 1  ;;  %p171_p13 = scmp.lt.s32.totalorder %s606_s17, 3 }
  0x29   : > { %p172_p3 = pnand %p437_p11, %p171_p13 }
  0x2a   : > { %s177_s27 = sand.u32 (!%p172_p3), 1, %s590_s13  }
  0x2b   : > { %175 = sbr.rel (%p172_p3) target bundleno = 284 (0x11c), region = 32  ;;  %s178_s4 = scalar_lea.sflag (!%p172_p3), [#allocation3], %s177_s27 }
  0x2c   : > { %s465_s28 = smul.u32 (!%p172_p3), 96, %s177_s27 }
  0x2e   : > { %s724_s7 = scalar_lea.vmem (!%p172_p3), [#allocation2], %s465_s28 }
  0x32   : > { %581 = dma.done.wait (%p672_p7), %s178_s4, 1536  }
  0x33   : > { %583 = vsyncadd (%p672_p7), %s178_s4, 4294965760  ;;  %v611_v0 = vmov 0.0   ;;  %v612_v1 = vmov 0   ;;  %v222_v2 = vld [vmem:[%s724_s7 + $0x8] sm:$0xff]  ;;  %v224_v3 = vld [vmem:[%s724_s7 + $0x18] sm:$0xff]  ;;  %vm245_vm0 = vcmask 392192  }
  0x34   : > { %316 = vmatprep.mubr.f32.mxu0 %v611_v0  ;;  %322 = vmatprep.mubr.f32.mxu1 %v611_v0  ;;  %v221_v4 = vld [vmem:[%s724_s7] sm:$0xff]  ;;  %v445_v5 = vpack.c.bf16 %v224_v3, %v222_v2  ;;  %v223_v6 = vld [vmem:[%s724_s7 + $0x10] sm:$0xff]  ;;  %v226_v7 = vld [vmem:[%s724_s7 + $0x28] sm:$0xff]  ;;  %p210_p7 = scmp.lt.s32.totalorder %s598_s15, 1 }
  0x35   : > { %525 = vset.pattern.permute.xlu0 %v612_v1  ;;  %v228_v8 = vld [vmem:[%s724_s7 + $0x38] sm:$0xff]  ;;  %v447_v9 = vpack.c.bf16 %v223_v6, %v221_v4  ;;  %v225_v11 = vld [vmem:[%s724_s7 + $0x20] sm:$0xff]  ;;  %v227_v12 = vld [vmem:[%s724_s7 + $0x30] sm:$0xff] }
  0x36   : > { %v449_v10 = vpack.c.bf16 %v228_v8, %v226_v7  ;;  %v230_v13 = vld [vmem:[%s724_s7 + $0x48] sm:$0xff]  ;;  %446 = vmatprep.subr.bf16.mxu0 %v445_v5  ;;  %457 = vmatprep.subr.bf16.mxu1 %v445_v5  ;;  %v232_v14 = vld [vmem:[%s724_s7 + $0x58] sm:$0xff]  ;;  %v451_v15 = vpack.c.bf16 %v227_v12, %v225_v11  ;;  %v233_v16 = vld [vmem:[%s779_s2] sm:$0xff]  ;;  %s791_s15 = smov (!%p210_p7, %s598_s15), 1 }
  0x37   : > { %448 = vmatpush1.bf16.msra.mxu0 %v447_v9  ;;  %460 = vmatpush1.bf16.msra.mxu1 %v447_v9  ;;  %v453_v17 = vpack.c.bf16 %v232_v14, %v230_v13  ;;  %v229_v18 = vld [vmem:[%s724_s7 + $0x40] sm:$0xff]  ;;  %v231_v19 = vld [vmem:[%s724_s7 + $0x50] sm:$0xff]  ;;  %v234_v20 = vld [vmem:[%s779_s2 + $0x8] sm:$0xf]  ;;  %s444_s11 = sshll.u32 %s791_s15, 5 }
  0x38   : > { %450 = vmatprep.subr.bf16.mxu0 %v449_v10  ;;  %458 = vmatprep.subr.bf16.mxu1 %v449_v10  ;;  %v455_v21 = vpack.c.bf16 %v231_v19, %v229_v18  ;;  %v219_v22 = vld [vmem:[%s778_s1] sm:$0xff]  ;;  %v220_v23 = vld [vmem:[%s778_s1 + $0x8] sm:$0xf]  ;;  %s217_s20 = scalar_lea.vmem %s780_s3, %s444_s11 }
  0x39   : > { %237 = vperm.xlu0 %525, %v233_v16  }
  0x3b   : > { %452 = vmatpush1.bf16.msra.mxu0 %v451_v15  ;;  %461 = vmatpush1.bf16.msra.mxu1 %v451_v15 }
  0x3c   : > { %454 = vmatprep.subr.bf16.mxu0 %v453_v17  ;;  %459 = vmatprep.subr.bf16.mxu1 %v453_v17 }
  0x3d   : > { %242 = vperm.xlu0 %525, %v234_v20  }
  0x3f   : > { %456 = vmatpush1.bf16.msra.mxu0 %v455_v21  ;;  %462 = vmatpush1.bf16.msra.mxu1 %v455_v21 }
  0x42   : > { %440 = vmatmul.mubr.msk.f32.vlgmr.msra.gmra.mrb[0].mxu0 %vm245_vm0, %v219_v22  ;;  %441 = vmatmul.mubr.msk.f32.vlgmr.msra.gmra.mrb[0].mxu1 %vm245_vm0, %v220_v23 }
  0xb8   : > { %v238_v24 = vpop.permute.xlu0 %237 }
  0xbc   : > { %v243_v25 = vpop.permute.xlu0 %242 }
 0x115   : > { %v318_v26 = vpop.f32.mrb[0].mxu0  ;;  %v324_v27 = vpop.f32.mrb[0].mxu1 }
 0x116   : > { %v319_v28 = vadd.f32 %v318_v26, %v238_v24  ;;  %v325_v29 = vadd.f32 %v324_v27, %v243_v25  ;;  %v320_v30 = vpop.f32.mrb[1].mxu0  ;;  %v326_v31 = vpop.f32.mrb[1].mxu1 }
 0x117   : > { %v321_v32 = vadd.f32 %v320_v30, %v238_v24  ;;  %v327_v33 = vadd.f32 %v326_v31, %v243_v25 }
 0x118   : > { %v329_v34 = vmax.f32 %v319_v28, 0.0  ;;  %v331_v35 = vmax.f32 %v325_v29, 0.0 }
 0x119   : > { %v330_v36 = vmax.f32 %v321_v32, 0.0  ;;  %v332_v37 = vmax.f32 %v327_v33, 0.0 }
 0x11a   : > { %333 = vst [vmem:[%s217_s20] sm:$0xff] %v329_v34  ;;  %335 = vst [vmem:[%s217_s20 + $0x10] sm:$0xf] %v331_v35 }
 0x11b   : > { %334 = vst [vmem:[%s217_s20 + $0x8] sm:$0xff] %v330_v36  ;;  %336 = vst [vmem:[%s217_s20 + $0x18] sm:$0xf] %v332_v37 }
 0x11c PF: > { %s16_s17 = sadd.s32 1, %s606_s17   ;;  %s783_s12 = smov %s590_s13 }
 0x11d   : > { %p13_p9 = scmp.ge.s32.totalorder %s16_s17, 4   ;;  %s784_s13 = smov %s594_s14 }
 0x11e   : > { %s785_s14 = smov %s678_s23  ;;  %s786_s15 = smov %s602_s16 }
 0x11f   : > { %s787_s16 = smov %s789_s19  ;;  %15 = sbr.rel (!%p13_p9) target bundleno = 4 (0x4), region = 72 }
 0x126   :  { %367 = vsyncpa [#allocation3], 1 }
 0x127   :  { %369 = vsyncpa [#allocation3 + $0x1], 1 }

</bundles_post_ra>
